<compile_context>
chip_gen: v7x
topology: tpu7x:2x2x1
jax: 0.10.0
libtpu: 0.0.40
codegen_flags: <defaults>
</compile_context>

<pallas_src>
import functools

import jax
import jax.numpy as jnp
from jax import lax
from jax.experimental import pallas as pl
from jax.experimental.pallas import tpu as pltpu

BN_EPS = 1e-5
LANE = 128
SUBLANE = 16          # row-tile granularity; multiple of 16 keeps bf16 tiles dense


def _round_up(x, m):
    return (x + m - 1) // m * m


def _vmem_limit_bytes():
    """~75% of physical VMEM for this generation (falls back to a safe 48 MiB)."""
    cap = None
    try:
        cap = getattr(pltpu.get_tpu_info(), "vmem_capacity_bytes", None)
    except Exception:
        cap = None
    if not cap:
        cap = 64 * 1024 * 1024
    return int(cap) * 3 // 4


def _tile_footprint(tr, k, cpad, patch_isz, y_isz, persist_y):
    """Rough per-step VMEM footprint (double-buffered blocks + f32 temporaries)."""
    kp = _round_up(k, LANE)                       # VMEM tiles are lane-padded
    pat = 2 * 4 * tr * kp * patch_isz             # patch input block, 2 buffers
    wgt = 2 * kp * cpad * patch_isz               # weight block
    outp = 2 * tr * cpad * 4                      # pass-2 f32 output block
    ybuf = (2 * 4 * tr * cpad * y_isz) if persist_y else 0
    tmps = 4 * tr * cpad * 4                      # per-slab f32 y / y*y / affine
    vecs = 8 * cpad * 4                           # bias/scale/shift/stats blocks
    return pat + wgt + outp + ybuf + tmps + vecs


def _pick_block_rows(r, k, cpad, patch_isz, y_isz, persist_y, budget):
    """Largest TR (multiple of SUBLANE) dividing R that fits the VMEM budget."""
    divisors = [m for m in range(SUBLANE, r + 1, SUBLANE) if r % m == 0]
    if not divisors:
        return r          # tiny/odd R: single full-extent block (always legal)
    fitting = [m for m in divisors
               if _tile_footprint(m, k, cpad, patch_isz, y_isz, persist_y) <= budget]
    return max(fitting) if fitting else min(divisors)


def _conv_slab(p_ref, w_ref, b_ref, s):
    """Conv (im2col matmul) + bias + ReLU for one pool-position slab -> (TR, Cpad) f32."""
    y = jnp.dot(p_ref[s], w_ref[...], preferred_element_type=jnp.float32)
    return jnp.maximum(y + b_ref[...], 0.0)


# ---------------------------- pass 1 kernels ---------------------------------
def _stats_kernel(p_ref, w_ref, b_ref, stats_ref):
    """Per-tile partial sum / sum-of-squares of the post-ReLU conv output."""
    acc_sum = jnp.zeros((1, w_ref.shape[1]), jnp.float32)
    acc_sq = jnp.zeros((1, w_ref.shape[1]), jnp.float32)
    for s in range(4):                                   # one slab live at a time
        y = _conv_slab(p_ref, w_ref, b_ref, s)
        acc_sum = acc_sum + jnp.sum(y, axis=0, keepdims=True)
        acc_sq = acc_sq + jnp.sum(y * y, axis=0, keepdims=True)
    stats_ref[0] = jnp.concatenate([acc_sum, acc_sq], axis=0)   # single fused store


def _stats_persist_kernel(p_ref, w_ref, b_ref, stats_ref, y_ref):
    """Like _stats_kernel, but also persists the post-ReLU activation y to HBM so
    pass 2 does not have to re-read the patches or redo the conv matmul."""
    acc_sum = jnp.zeros((1, w_ref.shape[1]), jnp.float32)
    acc_sq = jnp.zeros((1, w_ref.shape[1]), jnp.float32)
    for s in range(4):
        y = _conv_slab(p_ref, w_ref, b_ref, s)
        y_ref[s] = y.astype(y_ref.dtype)
        acc_sum = acc_sum + jnp.sum(y, axis=0, keepdims=True)
        acc_sq = acc_sq + jnp.sum(y * y, axis=0, keepdims=True)
    stats_ref[0] = jnp.concatenate([acc_sum, acc_sq], axis=0)


# ---------------------------- pass 2 kernels ---------------------------------
def _apply_from_y_kernel(y_ref, scale_ref, shift_ref, o_ref):
    """BN affine + 2x2 max-pool from the persisted activation (no conv recompute)."""
    best = y_ref[0].astype(jnp.float32) * scale_ref[...] + shift_ref[...]
    for s in range(1, 4):
        cur = y_ref[s].astype(jnp.float32) * scale_ref[...] + shift_ref[...]
        best = jnp.maximum(best, cur)
    o_ref[...] = best.astype(o_ref.dtype)


def _apply_recompute_kernel(p_ref, w_ref, b_ref, scale_ref, shift_ref, o_ref):
    """Recompute conv+bias+ReLU per slab, apply BN affine, 2x2 max-pool."""
    best = None
    for s in range(4):
        y = _conv_slab(p_ref, w_ref, b_ref, s)
        y = y * scale_ref[...] + shift_ref[...]
        best = y if best is None else jnp.maximum(best, y)
    o_ref[...] = best.astype(o_ref.dtype)


# ------------------------------- wrapper --------------------------------------
def _im2col_pooled(x_nchw):
    """(4, N*Ho*Wo, 9*Cin) im2col rows for a 3x3/pad-1 conv, grouped by 2x2
    pool-window position.  Pure data-movement glue (no arithmetic)."""
    n, cin, h, w = x_nchw.shape
    ho, wo = h // 2, w // 2
    x_nhwc = jnp.transpose(x_nchw, (0, 2, 3, 1))
    xp = jnp.pad(x_nhwc, ((0, 0), (1, 1), (1, 1), (0, 0)))
    slabs = []
    for ph in range(2):
        for pw in range(2):
            taps = []
            for kh in range(3):
                for kw in range(3):
                    sl = xp[:, ph + kh: ph + kh + 2 * ho: 2,
                               pw + kw: pw + kw + 2 * wo: 2, :]   # (N,Ho,Wo,Cin)
                    taps.append(sl)
            patch = jnp.concatenate(taps, axis=-1)                # (N,Ho,Wo,9*Cin)
            slabs.append(patch.reshape(n * ho * wo, 9 * cin))
    return jnp.stack(slabs, axis=0)                               # (4, R, 9*Cin)


@functools.partial(jax.jit, static_argnames=("block_rows", "compute_dtype",
                                              "persist_y", "channels_last"))
def conv_block_forward(x_nchw, conv_w, conv_b, bn_gamma, bn_beta, *,
                       block_rows=None, compute_dtype=jnp.bfloat16,
                       persist_y=None, channels_last=False):
    """Matches ConvolutionalBlock.forward (training-mode BN) for NCHW input.

    compute_dtype=bfloat16 (default) halves the dominant HBM traffic and uses the
    MXU's native bf16 path on all generations; post-matmul bias/ReLU/BN math and
    the BN statistics stay in f32.  Use compute_dtype=float32 for bit-accurate
    comparison against an f32 reference.  persist_y=None auto-chooses between
    persisting the pass-1 activation (large Cin) and recomputing the conv in
    pass 2 (small Cin)."""
    n, cin, h, w = x_nchw.shape
    if h % 2 or w % 2:
        # TODO(synk): odd H/W — BatchNorm2d sees the full conv output while
        # MaxPool2d floors; the pool-grouped im2col would drop the last row/col
        # from the BN statistics, so only even spatial dims are supported.
        raise ValueError("conv_block_forward requires even H and W")
    cout = conv_w.shape[0]
    ho, wo = h // 2, w // 2
    r = n * ho * wo
    k = 9 * cin
    cpad = _round_up(cout, LANE)

    patch_isz = jnp.dtype(compute_dtype).itemsize
    y_dtype = compute_dtype
    y_isz = jnp.dtype(y_dtype).itemsize

    if persist_y is None:
        # persist when re-reading patches in pass 2 would cost more than
        # writing + reading the activation once.
        persist_y = (k * patch_isz) >= (2 * cpad * y_isz)

    vmem_limit = _vmem_limit_bytes()
    budget = int(vmem_limit * 0.8)
    if block_rows is not None:
        tr = block_rows
    else:
        tr = _pick_block_rows(r, k, cpad, patch_isz, y_isz, persist_y, budget)
    if r % tr:
        raise ValueError(f"block_rows={tr} must divide R={r}")
    num_tiles = r // tr
    grid = (num_tiles,)

    patches = _im2col_pooled(x_nchw).astype(compute_dtype)        # (4, R, K)

    # (Cout, Cin, 3, 3) -> (kh, kw, Cin, Cout) -> (K, Cout), lane-padded.
    w2d = jnp.transpose(conv_w, (2, 3, 1, 0)).reshape(k, cout)
    w2d = jnp.pad(w2d, ((0, 0), (0, cpad - cout))).astype(compute_dtype)
    b2d = jnp.pad(conv_b.reshape(1, cout).astype(jnp.float32),
                  ((0, 0), (0, cpad - cout)))
    g2d = jnp.pad(bn_gamma.reshape(1, cout).astype(jnp.float32),
                  ((0, 0), (0, cpad - cout)))
    beta2d = jnp.pad(bn_beta.reshape(1, cout).astype(jnp.float32),
                     ((0, 0), (0, cpad - cout)))

    p_spec = pl.BlockSpec((4, tr, k), lambda i: (0, i, 0))
    w_spec = pl.BlockSpec((k, cpad), lambda i: (0, 0))
    v_spec = pl.BlockSpec((1, cpad), lambda i: (0, 0))
    stats_spec = pl.BlockSpec((1, 2, cpad), lambda i: (i, 0, 0))
    y_spec = pl.BlockSpec((4, tr, cpad), lambda i: (0, i, 0))
    o_spec = pl.BlockSpec((tr, cpad), lambda i: (i, 0))

    cparams = pltpu.CompilerParams(dimension_semantics=("parallel",),
                                   vmem_limit_bytes=vmem_limit)

    matmul_flops = 2 * 4 * r * k * cpad
    patch_bytes = 4 * r * k * patch_isz
    w_bytes = k * cpad * patch_isz
    y_bytes = 4 * r * cpad * y_isz
    out_bytes = r * cpad * 4

    # ---- pass 1: per-tile partial per-channel sum / sum-of-squares ------------
    if persist_y:
        stats, y_flat = pl.pallas_call(
            _stats_persist_kernel,
            out_shape=(jax.ShapeDtypeStruct((num_tiles, 2, cpad), jnp.float32),
                       jax.ShapeDtypeStruct((4, r, cpad), y_dtype)),
            grid=grid,
            in_specs=[p_spec, w_spec, v_spec],
            out_specs=(stats_spec, y_spec),
            compiler_params=cparams,
            cost_estimate=pl.CostEstimate(
                flops=matmul_flops, transcendentals=0,
                bytes_accessed=patch_bytes + w_bytes + y_bytes),
        )(patches, w2d, b2d)
    else:
        stats = pl.pallas_call(
            _stats_kernel,
            out_shape=jax.ShapeDtypeStruct((num_tiles, 2, cpad), jnp.float32),
            grid=grid,
            in_specs=[p_spec, w_spec, v_spec],
            out_specs=stats_spec,
            compiler_params=cparams,
            cost_estimate=pl.CostEstimate(
                flops=matmul_flops, transcendentals=0,
                bytes_accessed=patch_bytes + w_bytes),
        )(patches, w2d, b2d)

    # Pairwise reduction of per-tile partials (better numerics than serial accum).
    ssum = jnp.sum(stats, axis=0)                       # (2, Cpad)
    total = jnp.float32(4 * r)                          # = N*H*W conv positions
    mean = ssum[0:1, :] / total
    var = jnp.maximum(ssum[1:2, :] / total - mean * mean, 0.0)
    scale = g2d * lax.rsqrt(var + BN_EPS)               # (1, Cpad)
    shift = beta2d - mean * scale                       # (1, Cpad)

    # ---- pass 2: BN affine + 2x2 max-pool, lane-dense (R, Cpad) output --------
    if persist_y:
        out = pl.pallas_call(
            _apply_from_y_kernel,
            out_shape=jax.ShapeDtypeStruct((r, cpad), jnp.float32),
            grid=grid,
            in_specs=[y_spec, v_spec, v_spec],
            out_specs=o_spec,
            compiler_params=cparams,
            cost_estimate=pl.CostEstimate(
                flops=12 * r * cpad, transcendentals=0,
                bytes_accessed=y_bytes + out_bytes),
        )(y_flat, scale, shift)
    else:
        out = pl.pallas_call(
            _apply_recompute_kernel,
            out_shape=jax.ShapeDtypeStruct((r, cpad), jnp.float32),
            grid=grid,
            in_specs=[p_spec, w_spec, v_spec, v_spec, v_spec],
            out_specs=o_spec,
            compiler_params=cparams,
            cost_estimate=pl.CostEstimate(
                flops=matmul_flops, transcendentals=0,
                bytes_accessed=patch_bytes + w_bytes + out_bytes),
        )(patches, w2d, b2d, scale, shift)

    out = out[:, :cout].reshape(n, ho, wo, cout)        # drop lane padding
    if channels_last:
        return out                                      # NHWC, skips the transpose
    return jnp.transpose(out, (0, 3, 1, 2))             # NCHW (module spec)


def _reference(x, conv_w, conv_b, bn_gamma, bn_beta):
    y = lax.conv_general_dilated(x, conv_w, window_strides=(1, 1),
                                 padding=((1, 1), (1, 1)),
                                 dimension_numbers=("NCHW", "OIHW", "NCHW"))
    y = y + conv_b[None, :, None, None]
    y = jnp.maximum(y, 0.0)
    mean = y.mean(axis=(0, 2, 3), keepdims=True)
    var = jnp.mean((y - mean) ** 2, axis=(0, 2, 3), keepdims=True)
    y = (bn_gamma[None, :, None, None] * (y - mean)
         / jnp.sqrt(var + BN_EPS) + bn_beta[None, :, None, None])
    y = lax.reduce_window(y, -jnp.inf, lax.max, (1, 1, 2, 2), (1, 1, 2, 2),
                          "VALID")
    return y


if __name__ == "__main__":
    N, CIN, COUT, H, W = 2, 4, 8, 16, 16
    key = jax.random.PRNGKey(0)
    kx, kw, kb = jax.random.split(key, 3)

    x = jax.random.normal(kx, (N, CIN, H, W), dtype=jnp.float32)
    fan_in = CIN * 3 * 3
    bound = 1.0 / (fan_in ** 0.5)
    conv_w = jax.random.uniform(kw, (COUT, CIN, 3, 3), jnp.float32, -bound, bound)
    conv_b = jax.random.uniform(kb, (COUT,), jnp.float32, -bound, bound)
    bn_gamma = jnp.ones((COUT,), jnp.float32)   # nn.BatchNorm2d default init
    bn_beta = jnp.zeros((COUT,), jnp.float32)

    ref = jax.block_until_ready(_reference(x, conv_w, conv_b, bn_gamma, bn_beta))

    # f32 path, block_rows=32 -> grid=(4,): exercises tiling, partial-stats
    # reduction, and BOTH pass-2 variants (recompute and persisted-y).
    for py in (False, True):
        out = conv_block_forward(x, conv_w, conv_b, bn_gamma, bn_beta,
                                 block_rows=32, compute_dtype=jnp.float32,
                                 persist_y=py)
        out = jax.block_until_ready(out)
        assert out.shape == (N, COUT, H // 2, W // 2), out.shape
        err = float(jnp.max(jnp.abs(out - ref)))
        assert jnp.allclose(out, ref, rtol=1e-4, atol=1e-4), (py, err)

    # bf16 fast path (default dtype), auto tile size + persisted-y bf16 activation.
    out_bf16 = conv_block_forward(x, conv_w, conv_b, bn_gamma, bn_beta,
                                  persist_y=True)
    out_bf16 = jax.block_until_ready(out_bf16)
    assert out_bf16.shape == (N, COUT, H // 2, W // 2), out_bf16.shape
    assert jnp.allclose(out_bf16, ref, rtol=5e-2, atol=5e-2), float(
        jnp.max(jnp.abs(out_bf16 - ref)))

    print("KERNEL_OK")
</pallas_src>

<mosaic_0001>
module attributes {stable_mosaic.version = 11 : i64} {
  func.func @_apply_recompute_kernel(%arg0: i32, %arg1: memref<4x32x36xf32, #tpu.memory_space<vmem>>, %arg2: memref<36x128xf32, #tpu.memory_space<vmem>>, %arg3: memref<1x128xf32, #tpu.memory_space<vmem>>, %arg4: memref<1x128xf32, #tpu.memory_space<vmem>>, %arg5: memref<1x128xf32, #tpu.memory_space<vmem>>, %arg6: memref<32x128xf32, #tpu.memory_space<vmem>>) attributes {dimension_semantics = [#tpu.dimension_semantics<parallel>], iteration_bounds = array<i64: 4>, scalar_prefetch = 0 : i64, scratch_operands = 0 : i64, tpu.core_type = #tpu.core_type<tc>, window_params = [{transform_indices = @transform_0, window_bounds = array<i64: 4, 32, 36>}, {pipeline_mode = #tpu.pipeline_mode<synchronous>, transform_indices = @transform_1, window_bounds = array<i64: 36, 128>}, {pipeline_mode = #tpu.pipeline_mode<synchronous>, transform_indices = @transform_2, window_bounds = array<i64: 1, 128>}, {pipeline_mode = #tpu.pipeline_mode<synchronous>, transform_indices = @transform_3, window_bounds = array<i64: 1, 128>}, {pipeline_mode = #tpu.pipeline_mode<synchronous>, transform_indices = @transform_4, window_bounds = array<i64: 1, 128>}, {transform_indices = @transform_5, window_bounds = array<i64: 32, 128>}]} {
    %c0 = arith.constant 0 : index
    %c0_0 = arith.constant 0 : index
    %c0_1 = arith.constant 0 : index
    %0 = vector.load %arg1[%c0, %c0_0, %c0_1] : memref<4x32x36xf32, #tpu.memory_space<vmem>>, vector<1x32x36xf32>
    %1 = vector.shape_cast %0 : vector<1x32x36xf32> to vector<32x36xf32>
    %c0_2 = arith.constant 0 : index
    %c0_3 = arith.constant 0 : index
    %2 = vector.load %arg2[%c0_2, %c0_3] : memref<36x128xf32, #tpu.memory_space<vmem>>, vector<36x128xf32>
    %cst = arith.constant dense<0.000000e+00> : vector<32x128xf32>
    %3 = tpu.matmul %1, %2, %cst {dimension_numbers = #tpu.dot_dimension_numbers<[1], [0], [0], [1], [0, 0, 1, 1], [], []>} : vector<32x36xf32>, vector<36x128xf32>, vector<32x128xf32> -> vector<32x128xf32>
    %c0_4 = arith.constant 0 : index
    %c0_5 = arith.constant 0 : index
    %4 = vector.load %arg3[%c0_4, %c0_5] : memref<1x128xf32, #tpu.memory_space<vmem>>, vector<1x128xf32>
    %5 = vector.broadcast %4 : vector<1x128xf32> to vector<32x128xf32>
    %6 = arith.addf %3, %5 : vector<32x128xf32>
    %cst_6 = arith.constant 0.000000e+00 : f32
    %7 = vector.broadcast %cst_6 : f32 to vector<32x128xf32>
    %8 = arith.maximumf %6, %7 : vector<32x128xf32>
    %c0_7 = arith.constant 0 : index
    %c0_8 = arith.constant 0 : index
    %9 = vector.load %arg4[%c0_7, %c0_8] : memref<1x128xf32, #tpu.memory_space<vmem>>, vector<1x128xf32>
    %10 = vector.broadcast %9 : vector<1x128xf32> to vector<32x128xf32>
    %11 = arith.mulf %8, %10 : vector<32x128xf32>
    %c0_9 = arith.constant 0 : index
    %c0_10 = arith.constant 0 : index
    %12 = vector.load %arg5[%c0_9, %c0_10] : memref<1x128xf32, #tpu.memory_space<vmem>>, vector<1x128xf32>
    %13 = vector.broadcast %12 : vector<1x128xf32> to vector<32x128xf32>
    %14 = arith.addf %11, %13 : vector<32x128xf32>
    %c1 = arith.constant 1 : index
    %c0_11 = arith.constant 0 : index
    %c0_12 = arith.constant 0 : index
    %15 = vector.load %arg1[%c1, %c0_11, %c0_12] : memref<4x32x36xf32, #tpu.memory_space<vmem>>, vector<1x32x36xf32>
    %16 = vector.shape_cast %15 : vector<1x32x36xf32> to vector<32x36xf32>
    %c0_13 = arith.constant 0 : index
    %c0_14 = arith.constant 0 : index
    %17 = vector.load %arg2[%c0_13, %c0_14] : memref<36x128xf32, #tpu.memory_space<vmem>>, vector<36x128xf32>
    %cst_15 = arith.constant dense<0.000000e+00> : vector<32x128xf32>
    %18 = tpu.matmul %16, %17, %cst_15 {dimension_numbers = #tpu.dot_dimension_numbers<[1], [0], [0], [1], [0, 0, 1, 1], [], []>} : vector<32x36xf32>, vector<36x128xf32>, vector<32x128xf32> -> vector<32x128xf32>
    %c0_16 = arith.constant 0 : index
    %c0_17 = arith.constant 0 : index
    %19 = vector.load %arg3[%c0_16, %c0_17] : memref<1x128xf32, #tpu.memory_space<vmem>>, vector<1x128xf32>
    %20 = vector.broadcast %19 : vector<1x128xf32> to vector<32x128xf32>
    %21 = arith.addf %18, %20 : vector<32x128xf32>
    %cst_18 = arith.constant 0.000000e+00 : f32
    %22 = vector.broadcast %cst_18 : f32 to vector<32x128xf32>
    %23 = arith.maximumf %21, %22 : vector<32x128xf32>
    %c0_19 = arith.constant 0 : index
    %c0_20 = arith.constant 0 : index
    %24 = vector.load %arg4[%c0_19, %c0_20] : memref<1x128xf32, #tpu.memory_space<vmem>>, vector<1x128xf32>
    %25 = vector.broadcast %24 : vector<1x128xf32> to vector<32x128xf32>
    %26 = arith.mulf %23, %25 : vector<32x128xf32>
    %c0_21 = arith.constant 0 : index
    %c0_22 = arith.constant 0 : index
    %27 = vector.load %arg5[%c0_21, %c0_22] : memref<1x128xf32, #tpu.memory_space<vmem>>, vector<1x128xf32>
    %28 = vector.broadcast %27 : vector<1x128xf32> to vector<32x128xf32>
    %29 = arith.addf %26, %28 : vector<32x128xf32>
    %30 = arith.maximumf %14, %29 : vector<32x128xf32>
    %c2 = arith.constant 2 : index
    %c0_23 = arith.constant 0 : index
    %c0_24 = arith.constant 0 : index
    %31 = vector.load %arg1[%c2, %c0_23, %c0_24] : memref<4x32x36xf32, #tpu.memory_space<vmem>>, vector<1x32x36xf32>
    %32 = vector.shape_cast %31 : vector<1x32x36xf32> to vector<32x36xf32>
    %c0_25 = arith.constant 0 : index
    %c0_26 = arith.constant 0 : index
    %33 = vector.load %arg2[%c0_25, %c0_26] : memref<36x128xf32, #tpu.memory_space<vmem>>, vector<36x128xf32>
    %cst_27 = arith.constant dense<0.000000e+00> : vector<32x128xf32>
    %34 = tpu.matmul %32, %33, %cst_27 {dimension_numbers = #tpu.dot_dimension_numbers<[1], [0], [0], [1], [0, 0, 1, 1], [], []>} : vector<32x36xf32>, vector<36x128xf32>, vector<32x128xf32> -> vector<32x128xf32>
    %c0_28 = arith.constant 0 : index
    %c0_29 = arith.constant 0 : index
    %35 = vector.load %arg3[%c0_28, %c0_29] : memref<1x128xf32, #tpu.memory_space<vmem>>, vector<1x128xf32>
    %36 = vector.broadcast %35 : vector<1x128xf32> to vector<32x128xf32>
    %37 = arith.addf %34, %36 : vector<32x128xf32>
    %cst_30 = arith.constant 0.000000e+00 : f32
    %38 = vector.broadcast %cst_30 : f32 to vector<32x128xf32>
    %39 = arith.maximumf %37, %38 : vector<32x128xf32>
    %c0_31 = arith.constant 0 : index
    %c0_32 = arith.constant 0 : index
    %40 = vector.load %arg4[%c0_31, %c0_32] : memref<1x128xf32, #tpu.memory_space<vmem>>, vector<1x128xf32>
    %41 = vector.broadcast %40 : vector<1x128xf32> to vector<32x128xf32>
    %42 = arith.mulf %39, %41 : vector<32x128xf32>
    %c0_33 = arith.constant 0 : index
    %c0_34 = arith.constant 0 : index
    %43 = vector.load %arg5[%c0_33, %c0_34] : memref<1x128xf32, #tpu.memory_space<vmem>>, vector<1x128xf32>
    %44 = vector.broadcast %43 : vector<1x128xf32> to vector<32x128xf32>
    %45 = arith.addf %42, %44 : vector<32x128xf32>
    %46 = arith.maximumf %30, %45 : vector<32x128xf32>
    %c3 = arith.constant 3 : index
    %c0_35 = arith.constant 0 : index
    %c0_36 = arith.constant 0 : index
    %47 = vector.load %arg1[%c3, %c0_35, %c0_36] : memref<4x32x36xf32, #tpu.memory_space<vmem>>, vector<1x32x36xf32>
    %48 = vector.shape_cast %47 : vector<1x32x36xf32> to vector<32x36xf32>
    %c0_37 = arith.constant 0 : index
    %c0_38 = arith.constant 0 : index
    %49 = vector.load %arg2[%c0_37, %c0_38] : memref<36x128xf32, #tpu.memory_space<vmem>>, vector<36x128xf32>
    %cst_39 = arith.constant dense<0.000000e+00> : vector<32x128xf32>
    %50 = tpu.matmul %48, %49, %cst_39 {dimension_numbers = #tpu.dot_dimension_numbers<[1], [0], [0], [1], [0, 0, 1, 1], [], []>} : vector<32x36xf32>, vector<36x128xf32>, vector<32x128xf32> -> vector<32x128xf32>
    %c0_40 = arith.constant 0 : index
    %c0_41 = arith.constant 0 : index
    %51 = vector.load %arg3[%c0_40, %c0_41] : memref<1x128xf32, #tpu.memory_space<vmem>>, vector<1x128xf32>
    %52 = vector.broadcast %51 : vector<1x128xf32> to vector<32x128xf32>
    %53 = arith.addf %50, %52 : vector<32x128xf32>
    %cst_42 = arith.constant 0.000000e+00 : f32
    %54 = vector.broadcast %cst_42 : f32 to vector<32x128xf32>
    %55 = arith.maximumf %53, %54 : vector<32x128xf32>
    %c0_43 = arith.constant 0 : index
    %c0_44 = arith.constant 0 : index
    %56 = vector.load %arg4[%c0_43, %c0_44] : memref<1x128xf32, #tpu.memory_space<vmem>>, vector<1x128xf32>
    %57 = vector.broadcast %56 : vector<1x128xf32> to vector<32x128xf32>
    %58 = arith.mulf %55, %57 : vector<32x128xf32>
    %c0_45 = arith.constant 0 : index
    %c0_46 = arith.constant 0 : index
    %59 = vector.load %arg5[%c0_45, %c0_46] : memref<1x128xf32, #tpu.memory_space<vmem>>, vector<1x128xf32>
    %60 = vector.broadcast %59 : vector<1x128xf32> to vector<32x128xf32>
    %61 = arith.addf %58, %60 : vector<32x128xf32>
    %62 = arith.maximumf %46, %61 : vector<32x128xf32>
    %c0_47 = arith.constant 0 : index
    %c0_48 = arith.constant 0 : index
    %63 = vector.load %arg6[%c0_47, %c0_48] : memref<32x128xf32, #tpu.memory_space<vmem>>, vector<32x128xf32>
    tpu.vector_store %arg6[%c0_47, %c0_48], %62 {strides = array<i32>} : memref<32x128xf32, #tpu.memory_space<vmem>>, vector<32x128xf32>,
    return
  }
  func.func @transform_0(%arg0: i32) -> (i32, i32, i32) {
    %c0_i32 = arith.constant 0 : i32
    %c0_i32_0 = arith.constant 0 : i32
    %c0_i32_1 = arith.constant 0 : i32
    return %c0_i32, %arg0, %c0_i32_0 : i32, i32, i32
  }
  func.func @transform_1(%arg0: i32) -> (i32, i32) {
    %c0_i32 = arith.constant 0 : i32
    %c0_i32_0 = arith.constant 0 : i32
    %c0_i32_1 = arith.constant 0 : i32
    return %c0_i32, %c0_i32_0 : i32, i32
  }
  func.func @transform_2(%arg0: i32) -> (i32, i32) {
    %c0_i32 = arith.constant 0 : i32
    %c0_i32_0 = arith.constant 0 : i32
    %c0_i32_1 = arith.constant 0 : i32
    return %c0_i32, %c0_i32_0 : i32, i32
  }
  func.func @transform_3(%arg0: i32) -> (i32, i32) {
    %c0_i32 = arith.constant 0 : i32
    %c0_i32_0 = arith.constant 0 : i32
    %c0_i32_1 = arith.constant 0 : i32
    return %c0_i32, %c0_i32_0 : i32, i32
  }
  func.func @transform_4(%arg0: i32) -> (i32, i32) {
    %c0_i32 = arith.constant 0 : i32
    %c0_i32_0 = arith.constant 0 : i32
    %c0_i32_1 = arith.constant 0 : i32
    return %c0_i32, %c0_i32_0 : i32, i32
  }
  func.func @transform_5(%arg0: i32) -> (i32, i32) {
    %c0_i32 = arith.constant 0 : i32
    %c0_i32_0 = arith.constant 0 : i32
    return %arg0, %c0_i32 : i32, i32
  }
}

module attributes {stable_mosaic.version = 11 : i64} {
  func.func @_stats_kernel(%arg0: i32, %arg1: memref<4x32x36xf32, #tpu.memory_space<vmem>>, %arg2: memref<36x128xf32, #tpu.memory_space<vmem>>, %arg3: memref<1x128xf32, #tpu.memory_space<vmem>>, %arg4: memref<1x2x128xf32, #tpu.memory_space<vmem>>) attributes {dimension_semantics = [#tpu.dimension_semantics<parallel>], iteration_bounds = array<i64: 4>, scalar_prefetch = 0 : i64, scratch_operands = 0 : i64, tpu.core_type = #tpu.core_type<tc>, window_params = [{transform_indices = @transform_0, window_bounds = array<i64: 4, 32, 36>}, {pipeline_mode = #tpu.pipeline_mode<synchronous>, transform_indices = @transform_1, window_bounds = array<i64: 36, 128>}, {pipeline_mode = #tpu.pipeline_mode<synchronous>, transform_indices = @transform_2, window_bounds = array<i64: 1, 128>}, {transform_indices = @transform_3, window_bounds = array<i64: 1, 2, 128>}]} {
    %cst = arith.constant 0.000000e+00 : f32
    %0 = vector.broadcast %cst : f32 to vector<1x128xf32>
    %cst_0 = arith.constant 0.000000e+00 : f32
    %1 = vector.broadcast %cst_0 : f32 to vector<1x128xf32>
    %c0 = arith.constant 0 : index
    %c0_1 = arith.constant 0 : index
    %c0_2 = arith.constant 0 : index
    %2 = vector.load %arg1[%c0, %c0_1, %c0_2] : memref<4x32x36xf32, #tpu.memory_space<vmem>>, vector<1x32x36xf32>
    %3 = vector.shape_cast %2 : vector<1x32x36xf32> to vector<32x36xf32>
    %c0_3 = arith.constant 0 : index
    %c0_4 = arith.constant 0 : index
    %4 = vector.load %arg2[%c0_3, %c0_4] : memref<36x128xf32, #tpu.memory_space<vmem>>, vector<36x128xf32>
    %cst_5 = arith.constant dense<0.000000e+00> : vector<32x128xf32>
    %5 = tpu.matmul %3, %4, %cst_5 {dimension_numbers = #tpu.dot_dimension_numbers<[1], [0], [0], [1], [0, 0, 1, 1], [], []>} : vector<32x36xf32>, vector<36x128xf32>, vector<32x128xf32> -> vector<32x128xf32>
    %c0_6 = arith.constant 0 : index
    %c0_7 = arith.constant 0 : index
    %6 = vector.load %arg3[%c0_6, %c0_7] : memref<1x128xf32, #tpu.memory_space<vmem>>, vector<1x128xf32>
    %7 = vector.broadcast %6 : vector<1x128xf32> to vector<32x128xf32>
    %8 = arith.addf %5, %7 : vector<32x128xf32>
    %cst_8 = arith.constant 0.000000e+00 : f32
    %9 = vector.broadcast %cst_8 : f32 to vector<32x128xf32>
    %10 = arith.maximumf %8, %9 : vector<32x128xf32>
    %cst_9 = arith.constant dense<0.000000e+00> : vector<128xf32>
    %11 = vector.multi_reduction <add>, %10, %cst_9 [0] : vector<32x128xf32> to vector<128xf32>
    %12 = vector.shape_cast %11 : vector<128xf32> to vector<1x128xf32>
    %13 = arith.addf %0, %12 : vector<1x128xf32>
    %14 = arith.mulf %10, %10 : vector<32x128xf32>
    %cst_10 = arith.constant dense<0.000000e+00> : vector<128xf32>
    %15 = vector.multi_reduction <add>, %14, %cst_10 [0] : vector<32x128xf32> to vector<128xf32>
    %16 = vector.shape_cast %15 : vector<128xf32> to vector<1x128xf32>
    %17 = arith.addf %1, %16 : vector<1x128xf32>
    %c1 = arith.constant 1 : index
    %c0_11 = arith.constant 0 : index
    %c0_12 = arith.constant 0 : index
    %18 = vector.load %arg1[%c1, %c0_11, %c0_12] : memref<4x32x36xf32, #tpu.memory_space<vmem>>, vector<1x32x36xf32>
    %19 = vector.shape_cast %18 : vector<1x32x36xf32> to vector<32x36xf32>
    %c0_13 = arith.constant 0 : index
    %c0_14 = arith.constant 0 : index
    %20 = vector.load %arg2[%c0_13, %c0_14] : memref<36x128xf32, #tpu.memory_space<vmem>>, vector<36x128xf32>
    %cst_15 = arith.constant dense<0.000000e+00> : vector<32x128xf32>
    %21 = tpu.matmul %19, %20, %cst_15 {dimension_numbers = #tpu.dot_dimension_numbers<[1], [0], [0], [1], [0, 0, 1, 1], [], []>} : vector<32x36xf32>, vector<36x128xf32>, vector<32x128xf32> -> vector<32x128xf32>
    %c0_16 = arith.constant 0 : index
    %c0_17 = arith.constant 0 : index
    %22 = vector.load %arg3[%c0_16, %c0_17] : memref<1x128xf32, #tpu.memory_space<vmem>>, vector<1x128xf32>
    %23 = vector.broadcast %22 : vector<1x128xf32> to vector<32x128xf32>
    %24 = arith.addf %21, %23 : vector<32x128xf32>
    %cst_18 = arith.constant 0.000000e+00 : f32
    %25 = vector.broadcast %cst_18 : f32 to vector<32x128xf32>
    %26 = arith.maximumf %24, %25 : vector<32x128xf32>
    %cst_19 = arith.constant dense<0.000000e+00> : vector<128xf32>
    %27 = vector.multi_reduction <add>, %26, %cst_19 [0] : vector<32x128xf32> to vector<128xf32>
    %28 = vector.shape_cast %27 : vector<128xf32> to vector<1x128xf32>
    %29 = arith.addf %13, %28 : vector<1x128xf32>
    %30 = arith.mulf %26, %26 : vector<32x128xf32>
    %cst_20 = arith.constant dense<0.000000e+00> : vector<128xf32>
    %31 = vector.multi_reduction <add>, %30, %cst_20 [0] : vector<32x128xf32> to vector<128xf32>
    %32 = vector.shape_cast %31 : vector<128xf32> to vector<1x128xf32>
    %33 = arith.addf %17, %32 : vector<1x128xf32>
    %c2 = arith.constant 2 : index
    %c0_21 = arith.constant 0 : index
    %c0_22 = arith.constant 0 : index
    %34 = vector.load %arg1[%c2, %c0_21, %c0_22] : memref<4x32x36xf32, #tpu.memory_space<vmem>>, vector<1x32x36xf32>
    %35 = vector.shape_cast %34 : vector<1x32x36xf32> to vector<32x36xf32>
    %c0_23 = arith.constant 0 : index
    %c0_24 = arith.constant 0 : index
    %36 = vector.load %arg2[%c0_23, %c0_24] : memref<36x128xf32, #tpu.memory_space<vmem>>, vector<36x128xf32>
    %cst_25 = arith.constant dense<0.000000e+00> : vector<32x128xf32>
    %37 = tpu.matmul %35, %36, %cst_25 {dimension_numbers = #tpu.dot_dimension_numbers<[1], [0], [0], [1], [0, 0, 1, 1], [], []>} : vector<32x36xf32>, vector<36x128xf32>, vector<32x128xf32> -> vector<32x128xf32>
    %c0_26 = arith.constant 0 : index
    %c0_27 = arith.constant 0 : index
    %38 = vector.load %arg3[%c0_26, %c0_27] : memref<1x128xf32, #tpu.memory_space<vmem>>, vector<1x128xf32>
    %39 = vector.broadcast %38 : vector<1x128xf32> to vector<32x128xf32>
    %40 = arith.addf %37, %39 : vector<32x128xf32>
    %cst_28 = arith.constant 0.000000e+00 : f32
    %41 = vector.broadcast %cst_28 : f32 to vector<32x128xf32>
    %42 = arith.maximumf %40, %41 : vector<32x128xf32>
    %cst_29 = arith.constant dense<0.000000e+00> : vector<128xf32>
    %43 = vector.multi_reduction <add>, %42, %cst_29 [0] : vector<32x128xf32> to vector<128xf32>
    %44 = vector.shape_cast %43 : vector<128xf32> to vector<1x128xf32>
    %45 = arith.addf %29, %44 : vector<1x128xf32>
    %46 = arith.mulf %42, %42 : vector<32x128xf32>
    %cst_30 = arith.constant dense<0.000000e+00> : vector<128xf32>
    %47 = vector.multi_reduction <add>, %46, %cst_30 [0] : vector<32x128xf32> to vector<128xf32>
    %48 = vector.shape_cast %47 : vector<128xf32> to vector<1x128xf32>
    %49 = arith.addf %33, %48 : vector<1x128xf32>
    %c3 = arith.constant 3 : index
    %c0_31 = arith.constant 0 : index
    %c0_32 = arith.constant 0 : index
    %50 = vector.load %arg1[%c3, %c0_31, %c0_32] : memref<4x32x36xf32, #tpu.memory_space<vmem>>, vector<1x32x36xf32>
    %51 = vector.shape_cast %50 : vector<1x32x36xf32> to vector<32x36xf32>
    %c0_33 = arith.constant 0 : index
    %c0_34 = arith.constant 0 : index
    %52 = vector.load %arg2[%c0_33, %c0_34] : memref<36x128xf32, #tpu.memory_space<vmem>>, vector<36x128xf32>
    %cst_35 = arith.constant dense<0.000000e+00> : vector<32x128xf32>
    %53 = tpu.matmul %51, %52, %cst_35 {dimension_numbers = #tpu.dot_dimension_numbers<[1], [0], [0], [1], [0, 0, 1, 1], [], []>} : vector<32x36xf32>, vector<36x128xf32>, vector<32x128xf32> -> vector<32x128xf32>
    %c0_36 = arith.constant 0 : index
    %c0_37 = arith.constant 0 : index
    %54 = vector.load %arg3[%c0_36, %c0_37] : memref<1x128xf32, #tpu.memory_space<vmem>>, vector<1x128xf32>
    %55 = vector.broadcast %54 : vector<1x128xf32> to vector<32x128xf32>
    %56 = arith.addf %53, %55 : vector<32x128xf32>
    %cst_38 = arith.constant 0.000000e+00 : f32
    %57 = vector.broadcast %cst_38 : f32 to vector<32x128xf32>
    %58 = arith.maximumf %56, %57 : vector<32x128xf32>
    %cst_39 = arith.constant dense<0.000000e+00> : vector<128xf32>
    %59 = vector.multi_reduction <add>, %58, %cst_39 [0] : vector<32x128xf32> to vector<128xf32>
    %60 = vector.shape_cast %59 : vector<128xf32> to vector<1x128xf32>
    %61 = arith.addf %45, %60 : vector<1x128xf32>
    %62 = arith.mulf %58, %58 : vector<32x128xf32>
    %cst_40 = arith.constant dense<0.000000e+00> : vector<128xf32>
    %63 = vector.multi_reduction <add>, %62, %cst_40 [0] : vector<32x128xf32> to vector<128xf32>
    %64 = vector.shape_cast %63 : vector<128xf32> to vector<1x128xf32>
    %65 = arith.addf %49, %64 : vector<1x128xf32>
    %66 = tpu.concatenate %61, %65 in 0 : vector<1x128xf32>, vector<1x128xf32> -> vector<2x128xf32>
    %c0_41 = arith.constant 0 : index
    %c0_42 = arith.constant 0 : index
    %c0_43 = arith.constant 0 : index
    %67 = vector.load %arg4[%c0_41, %c0_42, %c0_43] : memref<1x2x128xf32, #tpu.memory_space<vmem>>, vector<1x2x128xf32>
    %68 = vector.shape_cast %67 : vector<1x2x128xf32> to vector<2x128xf32>
    %69 = vector.shape_cast %66 : vector<2x128xf32> to vector<1x2x128xf32>
    tpu.vector_store %arg4[%c0_41, %c0_42, %c0_43], %69 {strides = array<i32>} : memref<1x2x128xf32, #tpu.memory_space<vmem>>, vector<1x2x128xf32>,
    return
  }
  func.func @transform_0(%arg0: i32) -> (i32, i32, i32) {
    %c0_i32 = arith.constant 0 : i32
    %c0_i32_0 = arith.constant 0 : i32
    %c0_i32_1 = arith.constant 0 : i32
    return %c0_i32, %arg0, %c0_i32_0 : i32, i32, i32
  }
  func.func @transform_1(%arg0: i32) -> (i32, i32) {
    %c0_i32 = arith.constant 0 : i32
    %c0_i32_0 = arith.constant 0 : i32
    %c0_i32_1 = arith.constant 0 : i32
    return %c0_i32, %c0_i32_0 : i32, i32
  }
  func.func @transform_2(%arg0: i32) -> (i32, i32) {
    %c0_i32 = arith.constant 0 : i32
    %c0_i32_0 = arith.constant 0 : i32
    %c0_i32_1 = arith.constant 0 : i32
    return %c0_i32, %c0_i32_0 : i32, i32
  }
  func.func @transform_3(%arg0: i32) -> (i32, i32, i32) {
    %c0_i32 = arith.constant 0 : i32
    %c0_i32_0 = arith.constant 0 : i32
    %c0_i32_1 = arith.constant 0 : i32
    return %arg0, %c0_i32, %c0_i32_0 : i32, i32, i32
  }
}

</mosaic_0001>

<bundles_post_ra>
// kernel: conv_block_forward.3
= control target key start
LH: loop header
LB: loop body
LE: loop exit
PB: predicated region body
PF: predicated region fallthrough
CT: control target
= control target key end

     0   :  { %s1145_s18 = smov 0   ;;  %s1147_s19 = smov 0   ;;  %s1339_s0 = inlined_call_operand.vmem [shape: f32[4,128,36], index: 0, kind: input, shape index: {}]   ;;  %s1340_s1 = inlined_call_operand.vmem [shape: f32[36,128], index: 1, kind: input, shape index: {}]   ;;  %s1341_s2 = inlined_call_operand.vmem [shape: f32[1,128], index: 2, kind: input, shape index: {}]   ;;  %s1342_s3 = inlined_call_operand.vmem [shape: f32[1,128], index: 3, kind: input, shape index: {}]   ;;  %s1343_s4 = inlined_call_operand.vmem [shape: f32[1,128], index: 4, kind: input, shape index: {}]   ;;  %s1344_s5 = inlined_call_operand.vmem [shape: f32[128,128], index: 5, kind: output, shape index: {}]  }
   0x1   :  { %s1149_s20 = smov 0  }
   0x2 LB: > { %s886_s21 = sadd.s32 4294967295, %s1113_s20   ;;  %s1162_s22 = sadd.s32 1, %s1113_s20   ;;  %s1113_s20 = sphi %s1149_s20, %s1347_s20   ;;  %s1109_s19 = sphi %s1147_s19, %s1346_s19   ;;  %s1105_s18 = sphi %s1145_s18, %s1345_s18  }
   0x3   : > { %s19_s23 = ssub.s32 %s1113_s20, %s1162_s22  ;;  %s22_s24 = sadd.s32 1, %s1109_s19 }
   0x4   : > { %p20_p0 = scmp.eq.s32.totalorder %s19_s23, 0  ;;  %p29_p1 = scmp.ne.s32.totalorder %s1109_s19, %s1105_s18 }
   0x5   : > { %p30_p2 = scmp.eq.s32.totalorder %s1113_s20, 0  ;;  %p889_p4 = scmp.ge.s32.totalorder %s1113_s20, 4 }
   0x6   : > { %s1171_s25 = scalar_select %p20_p0, %s1109_s19, %s22_s24  }
   0x7   : > { %p31_p3 = por %p30_p2, %p29_p1  ;;  %177 = sbr.rel (%p889_p4) target bundleno = 26 (0x1a), region = 32 }
   0xe   : > { %180 = sbr.rel (!%p31_p3) target bundleno = 26 (0x1a), region = 36  ;;  %s182_s26 = sand.u32 (%p31_p3), 1, %s1109_s19  }
   0xf   : > { %s934_s27 = sshll.u32 (%p31_p3), %s1113_s20, 5  ;;  %s890_s28 = sshll.u32 (%p31_p3), %s182_s26, 7 }
  0x10   : > { %s1179_s6 = scalar_lea.vmem (%p31_p3), %s1339_s0, %s934_s27  ;;  %s184_s7 = scalar_lea.vmem (%p31_p3), [#allocation2], %s890_s28 }
  0x11   : > { %v245_v0 = vld [vmem:[%s1179_s6] sm:$0xff] (%p31_p3)  ;;  %v247_v1 = vld [vmem:[%s1179_s6 + $0x8] sm:$0xff] (%p31_p3)  ;;  %v249_v2 = vld [vmem:[%s1179_s6 + $0x10] sm:$0xff] (%p31_p3) }
  0x12   : > { %246 = vst [vmem:[%s184_s7] sm:$0xff] (%p31_p3), %v245_v0  ;;  %248 = vst [vmem:[%s184_s7 + $0x8] sm:$0xff] (%p31_p3), %v247_v1  ;;  %v251_v3 = vld [vmem:[%s1179_s6 + $0x18] sm:$0xff] (%p31_p3)  ;;  %v253_v4 = vld [vmem:[%s1179_s6 + $0x80] sm:$0xff] (%p31_p3) }
  0x13   : > { %250 = vst [vmem:[%s184_s7 + $0x10] sm:$0xff] (%p31_p3), %v249_v2  ;;  %v255_v5 = vld [vmem:[%s1179_s6 + $0x88] sm:$0xff] (%p31_p3)  ;;  %252 = vst [vmem:[%s184_s7 + $0x18] sm:$0xff] (%p31_p3), %v251_v3  ;;  %v257_v6 = vld [vmem:[%s1179_s6 + $0x90] sm:$0xff] (%p31_p3) }
  0x14   : > { %254 = vst [vmem:[%s184_s7 + $0x20] sm:$0xff] (%p31_p3), %v253_v4  ;;  %256 = vst [vmem:[%s184_s7 + $0x28] sm:$0xff] (%p31_p3), %v255_v5  ;;  %v259_v7 = vld [vmem:[%s1179_s6 + $0x98] sm:$0xff] (%p31_p3)  ;;  %v261_v8 = vld [vmem:[%s1179_s6 + $0x100] sm:$0xff] (%p31_p3) }
  0x15   : > { %258 = vst [vmem:[%s184_s7 + $0x30] sm:$0xff] %v257_v6  ;;  %260 = vst [vmem:[%s184_s7 + $0x38] sm:$0xff] %v259_v7  ;;  %v263_v9 = vld [vmem:[%s1179_s6 + $0x108] sm:$0xff]  ;;  %v265_v10 = vld [vmem:[%s1179_s6 + $0x110] sm:$0xff] }
  0x16   : > { %262 = vst [vmem:[%s184_s7 + $0x40] sm:$0xff] %v261_v8  ;;  %v267_v11 = vld [vmem:[%s1179_s6 + $0x118] sm:$0xff]  ;;  %264 = vst [vmem:[%s184_s7 + $0x48] sm:$0xff] %v263_v9  ;;  %v269_v12 = vld [vmem:[%s1179_s6 + $0x180] sm:$0xff] }
  0x17   : > { %266 = vst [vmem:[%s184_s7 + $0x50] sm:$0xff] %v265_v10  ;;  %268 = vst [vmem:[%s184_s7 + $0x58] sm:$0xff] %v267_v11  ;;  %v271_v13 = vld [vmem:[%s1179_s6 + $0x188] sm:$0xff]  ;;  %v273_v14 = vld [vmem:[%s1179_s6 + $0x190] sm:$0xff] }
  0x18   : > { %270 = vst [vmem:[%s184_s7 + $0x60] sm:$0xff] %v269_v12  ;;  %272 = vst [vmem:[%s184_s7 + $0x68] sm:$0xff] %v271_v13  ;;  %v275_v15 = vld [vmem:[%s1179_s6 + $0x198] sm:$0xff] }
  0x19   : > { %274 = vst [vmem:[%s184_s7 + $0x70] sm:$0xff] %v273_v14  ;;  %276 = vst [vmem:[%s184_s7 + $0x78] sm:$0xff] %v275_v15 }
  0x1a PF: > { %p893_p5 = scmp.ge.s32.totalorder %s1113_s20, 1  ;;  %p281_p6 = scmp.lt.s32.totalorder %s1113_s20, 5 }
  0x1c   : > { %p282_p7 = pnand %p893_p5, %p281_p6 }
  0x1d   : > { %v326_v16 = vld [vmem:[%s1340_s1] sm:$0xff] (!%p282_p7)  ;;  %v327_v17 = vld [vmem:[%s1340_s1 + $0x8] sm:$0xff] (!%p282_p7)  ;;  %v328_v18 = vld [vmem:[%s1340_s1 + $0x10] sm:$0xff] (!%p282_p7)  ;;  %s288_s14 = sand.u32 (!%p282_p7), 1, %s1105_s18   ;;  %vm338_vm0 = vcmask (!%p282_p7), 293888   ;;  %vm351_vm1 = vcmask (!%p282_p7), 1043456  }
  0x1e   : > { %285 = sbr.rel (%p282_p7) target bundleno = 283 (0x11b), region = 74  ;;  %v1035_v19 = vpack.c.bf16 (!%p282_p7), %v327_v17, %v326_v16  ;;  %v329_v20 = vld [vmem:[%s1340_s1 + $0x18] sm:$0xff] (!%p282_p7)  ;;  %s894_s17 = sshll.u32 (!%p282_p7), %s288_s14, 7  ;;  %v330_v24 = vld [vmem:[%s1340_s1 + $0x20] sm:$0xf] (!%p282_p7) }
  0x1f   : > { %v1039_v21 = vpack.c.bf16 (!%p282_p7), %v329_v20, %v328_v18  ;;  %s1212_s23 = scalar_lea.vmem (!%p282_p7), [#allocation2], %s894_s17  ;;  %v1260_v39 = vld [vmem:[%s1341_s2] ss:$0 sm:$0xff] (!%p282_p7)  ;;  %s895_s7 = sshll.u32 (!%p282_p7), %s886_s21, 2 }
  0x20   : > { %1036 = vmatprep.subr.bf16.mxu0 (!%p282_p7), %v1035_v19  ;;  %1044 = vmatprep.subr.bf16.mxu1 (!%p282_p7), %v1035_v19  ;;  %v322_v22 = vld [vmem:[%s1212_s23] sm:$0xff] (!%p282_p7)  ;;  %v323_v25 = vld [vmem:[%s1212_s23 + $0x8] sm:$0xff] (!%p282_p7)  ;;  %v324_v27 = vld [vmem:[%s1212_s23 + $0x10] sm:$0xff] (!%p282_p7)  ;;  %p317_p8 = scmp.lt.s32.totalorder (!%p282_p7), %s895_s7, 15 }
  0x21   : > { %v905_v23 = vld [vmem:[%s1212_s23 + $0x20] sm:$0xff] (!%p282_p7)  ;;  %1038 = vmatpush3.bf16.msra.mxu0 (!%p282_p7), %v1035_v19  ;;  %1046 = vmatpush3.bf16.msra.mxu1 (!%p282_p7), %v1035_v19  ;;  %v906_v26 = vld [vmem:[%s1212_s23 + $0x28] sm:$0xff] (!%p282_p7)  ;;  %v907_v28 = vld [vmem:[%s1212_s23 + $0x30] sm:$0xff] (!%p282_p7) }
  0x22   : > { %1040 = vmatprep.subr.bf16.mxu0 (!%p282_p7), %v1039_v21  ;;  %1048 = vmatprep.subr.bf16.mxu1 (!%p282_p7), %v1039_v21  ;;  %v325_v29 = vld [vmem:[%s1212_s23 + $0x18] sm:$0xff] (!%p282_p7)  ;;  %v914_v31 = vld [vmem:[%s1212_s23 + $0x40] sm:$0xff] (!%p282_p7)  ;;  %v915_v33 = vld [vmem:[%s1212_s23 + $0x48] sm:$0xff] (!%p282_p7) }
  0x23   : > { %981 = vmatprep.mubr.msk.f32.mxu0 (!%p282_p7), %vm338_vm0, %v322_v22  ;;  %997 = vmatprep.mubr.msk.f32.mxu1 (!%p282_p7), %vm338_vm0, %v905_v23  ;;  %v908_v30 = vld [vmem:[%s1212_s23 + $0x38] sm:$0xff] (!%p282_p7)  ;;  %v923_v32 = vld [vmem:[%s1212_s23 + $0x60] sm:$0xff] (!%p282_p7)  ;;  %v924_v34 = vld [vmem:[%s1212_s23 + $0x68] sm:$0xff] (!%p282_p7) }
  0x24   : > { %v916_v35 = vld [vmem:[%s1212_s23 + $0x50] sm:$0xff] (!%p282_p7)  ;;  %v917_v37 = vld [vmem:[%s1212_s23 + $0x58] sm:$0xff] (!%p282_p7)  ;;  %v1267_v46 = vld [vmem:[%s1342_s3] ss:$0 sm:$0xff] (!%p282_p7) }
  0x25   : > { %1042 = vmatpush3.bf16.msra.mxu0 %v1039_v21  ;;  %1050 = vmatpush3.bf16.msra.mxu1 %v1039_v21  ;;  %v925_v36 = vld [vmem:[%s1212_s23 + $0x70] sm:$0xff]  ;;  %v926_v38 = vld [vmem:[%s1212_s23 + $0x78] sm:$0xff]  ;;  %v1274_v51 = vld [vmem:[%s1343_s4] ss:$0 sm:$0xff]  ;;  %s1349_s7 = smov (!%p317_p8, %s895_s7), 15 }
  0x26   : > { %979 = vmatprep.subr.msk.mxu0 %vm351_vm1, %v330_v24  ;;  %995 = vmatprep.subr.msk.mxu1 %vm351_vm1, %v330_v24  ;;  %s896_s20 = sshll.u32 %s1349_s7, 3 }
  0x27   : > { %s320_s9 = scalar_lea.vmem %s1344_s5, %s896_s20 }
  0x29   : > { %980 = vmatpush3.msk.msra.mxu0 %vm351_vm1, %v330_v24  ;;  %996 = vmatpush3.msk.msra.mxu1 %vm351_vm1, %v330_v24 }
  0x2a   : > { %982 = vmatmul.mubr.msk.f32.vlgmr.msra.gmra.mrb[0].mxu0 %vm338_vm0, %v323_v25  ;;  %998 = vmatmul.mubr.msk.f32.vlgmr.msra.gmra.mrb[0].mxu1 %vm338_vm0, %v906_v26 }
  0x2b   : > { %1052 = vmatprep.subr.bf16.mxu0 %v1035_v19  ;;  %1060 = vmatprep.subr.bf16.mxu1 %v1035_v19 }
  0x2c   : > { %1054 = vmatpush3.bf16.msra.mxu0 %v1035_v19  ;;  %1062 = vmatpush3.bf16.msra.mxu1 %v1035_v19 }
  0x2d   : > { %1056 = vmatprep.subr.bf16.mxu0 %v1039_v21  ;;  %984 = vmatprep.mubr.msk.f32.mxu0 %vm338_vm0, %v324_v27 }
  0x2e   : > { %1000 = vmatprep.mubr.msk.f32.mxu1 %vm338_vm0, %v907_v28  ;;  %985 = vmatmul.mubr.msk.f32.gmra.mrb[2].mxu0 %vm338_vm0, %v325_v29 }
  0x2f   : > { %1001 = vmatmul.mubr.msk.f32.gmra.mrb[2].mxu1 %vm338_vm0, %v908_v30  ;;  %1064 = vmatprep.subr.bf16.mxu1 %v1039_v21 }
  0x30   : > { %1058 = vmatpush3.bf16.msra.mxu0 %v1039_v21  ;;  %1066 = vmatpush3.bf16.msra.mxu1 %v1039_v21 }
  0x31   : > { %1011 = vmatprep.subr.msk.mxu0 %vm351_vm1, %v330_v24  ;;  %1013 = vmatprep.mubr.msk.f32.mxu0 %vm338_vm0, %v914_v31 }
  0x32   : > { %1027 = vmatprep.subr.msk.mxu1 %vm351_vm1, %v330_v24  ;;  %1029 = vmatprep.mubr.msk.f32.mxu1 %vm338_vm0, %v923_v32 }
  0x34   : > { %1012 = vmatpush3.msk.msra.mxu0 %vm351_vm1, %v330_v24  ;;  %1028 = vmatpush3.msk.msra.mxu1 %vm351_vm1, %v330_v24 }
  0x35   : > { %1014 = vmatmul.mubr.msk.f32.vlgmr.msra.gmra.mrb[4].mxu0 %vm338_vm0, %v915_v33  ;;  %1030 = vmatmul.mubr.msk.f32.vlgmr.msra.gmra.mrb[4].mxu1 %vm338_vm0, %v924_v34 }
  0x36   : > { %1016 = vmatprep.mubr.msk.f32.mxu0 %vm338_vm0, %v916_v35  ;;  %1032 = vmatprep.mubr.msk.f32.mxu1 %vm338_vm0, %v925_v36 }
  0x39   : > { %1017 = vmatmul.mubr.msk.f32.gmra.mrb[6].mxu0 %vm338_vm0, %v917_v37  ;;  %1033 = vmatmul.mubr.msk.f32.gmra.mrb[6].mxu1 %vm338_vm0, %v926_v38 }
  0xfd   : > { %v983_v40 = vpop.f32.mrb[0].mxu0  ;;  %v999_v41 = vpop.f32.mrb[0].mxu1 }
  0xfe   : > { %v427_v42 = vadd.f32 %v983_v40, %v1260_v39  ;;  %v555_v43 = vadd.f32 %v999_v41, %v1260_v39  ;;  %v421_v44 = vpop.f32.mrb[1].mxu0  ;;  %v549_v45 = vpop.f32.mrb[1].mxu1 }
  0xff   : > { %v422_v47 = vadd.f32 %v1260_v39, %v421_v44  ;;  %v550_v48 = vadd.f32 %v1260_v39, %v549_v45 }
 0x100   : > { %v441_v49 = vmax.f32 %v427_v42, 0.0  ;;  %v569_v50 = vmax.f32 %v555_v43, 0.0 }
 0x101   : > { %v440_v52 = vmax.f32 %v422_v47, 0.0  ;;  %v568_v53 = vmax.f32 %v550_v48, 0.0  ;;  %v986_v54 = vpop.f32.mrb[2].mxu0 }
 0x102   : > { %v452_v55 = vmul.f32 %v1267_v46, %v441_v49  ;;  %v573_v56 = vmul.f32 %v1267_v46, %v569_v50  ;;  %v437_v57 = vadd.f32 %v986_v54, %v1260_v39  ;;  %v1002_v58 = vpop.f32.mrb[2].mxu1  ;;  %v431_v59 = vpop.f32.mrb[3].mxu0 }
 0x103   : > { %v451_v60 = vmul.f32 %v1267_v46, %v440_v52  ;;  %v572_v61 = vmul.f32 %v1267_v46, %v568_v53  ;;  %v565_v62 = vadd.f32 %v1002_v58, %v1260_v39  ;;  %v432_v63 = vadd.f32 %v1260_v39, %v431_v59  ;;  %v559_v0 = vpop.f32.mrb[3].mxu1 }
 0x104   : > { %v463_v1 = vadd.f32 %v1274_v51, %v452_v55  ;;  %v577_v2 = vadd.f32 %v1274_v51, %v573_v56  ;;  %v443_v3 = vmax.f32 %v437_v57, 0.0  ;;  %v560_v4 = vadd.f32 %v1260_v39, %v559_v0 }
 0x105   : > { %v462_v5 = vadd.f32 %v1274_v51, %v451_v60  ;;  %v576_v6 = vadd.f32 %v1274_v51, %v572_v61  ;;  %v571_v7 = vmax.f32 %v565_v62, 0.0  ;;  %v442_v8 = vmax.f32 %v432_v63, 0.0 }
 0x106   : > { %v581_v9 = vmax.f32 %v463_v1, %v577_v2  ;;  %v454_v10 = vmul.f32 %v1267_v46, %v443_v3  ;;  %v570_v11 = vmax.f32 %v560_v4, 0.0 }
 0x107   : > { %v580_v12 = vmax.f32 %v462_v5, %v576_v6  ;;  %v575_v13 = vmul.f32 %v1267_v46, %v571_v7  ;;  %v453_v14 = vmul.f32 %v1267_v46, %v442_v8 }
 0x108   : > { %v465_v15 = vadd.f32 %v1274_v51, %v454_v10  ;;  %v574_v16 = vmul.f32 %v1267_v46, %v570_v11  ;;  %v1015_v17 = vpop.f32.mrb[4].mxu0  ;;  %v1031_v18 = vpop.f32.mrb[4].mxu1 }
 0x109   : > { %v579_v19 = vadd.f32 %v1274_v51, %v575_v13  ;;  %v464_v20 = vadd.f32 %v1274_v51, %v453_v14  ;;  %v673_v21 = vadd.f32 %v1015_v17, %v1260_v39  ;;  %v667_v22 = vpop.f32.mrb[5].mxu0  ;;  %v791_v23 = vadd.f32 %v1031_v18, %v1260_v39  ;;  %v785_v24 = vpop.f32.mrb[5].mxu1 }
 0x10a   : > { %v578_v25 = vadd.f32 %v1274_v51, %v574_v16  ;;  %v668_v26 = vadd.f32 %v1260_v39, %v667_v22  ;;  %v786_v27 = vadd.f32 %v1260_v39, %v785_v24 }
 0x10b   : > { %v583_v28 = vmax.f32 %v465_v15, %v579_v19  ;;  %v687_v29 = vmax.f32 %v673_v21, 0.0  ;;  %v805_v30 = vmax.f32 %v791_v23, 0.0 }
 0x10c   : > { %v582_v31 = vmax.f32 %v464_v20, %v578_v25  ;;  %v686_v32 = vmax.f32 %v668_v26, 0.0  ;;  %v804_v33 = vmax.f32 %v786_v27, 0.0  ;;  %v1018_v34 = vpop.f32.mrb[6].mxu0  ;;  %v1034_v35 = vpop.f32.mrb[6].mxu1 }
 0x10d   : > { %v691_v36 = vmul.f32 %v1267_v46, %v687_v29  ;;  %v809_v37 = vmul.f32 %v1267_v46, %v805_v30  ;;  %v683_v38 = vadd.f32 %v1018_v34, %v1260_v39  ;;  %v677_v40 = vpop.f32.mrb[7].mxu0  ;;  %v801_v41 = vadd.f32 %v1034_v35, %v1260_v39  ;;  %v795_v42 = vpop.f32.mrb[7].mxu1 }
 0x10e   : > { %v690_v43 = vmul.f32 %v1267_v46, %v686_v32  ;;  %v808_v44 = vmul.f32 %v1267_v46, %v804_v33  ;;  %v678_v45 = vadd.f32 %v1260_v39, %v677_v40  ;;  %v796_v47 = vadd.f32 %v1260_v39, %v795_v42 }
 0x10f   : > { %v695_v48 = vadd.f32 %v1274_v51, %v691_v36  ;;  %v813_v49 = vadd.f32 %v1274_v51, %v809_v37  ;;  %v689_v50 = vmax.f32 %v683_v38, 0.0  ;;  %v807_v52 = vmax.f32 %v801_v41, 0.0 }
 0x110   : > { %v694_v53 = vadd.f32 %v1274_v51, %v690_v43  ;;  %v812_v54 = vadd.f32 %v1274_v51, %v808_v44  ;;  %v688_v55 = vmax.f32 %v678_v45, 0.0  ;;  %v806_v56 = vmax.f32 %v796_v47, 0.0 }
 0x111   : > { %v699_v57 = vmax.f32 %v581_v9, %v695_v48  ;;  %v693_v58 = vmul.f32 %v1267_v46, %v689_v50  ;;  %v811_v59 = vmul.f32 %v1267_v46, %v807_v52 }
 0x112   : > { %v698_v60 = vmax.f32 %v580_v12, %v694_v53  ;;  %v692_v39 = vmul.f32 %v1267_v46, %v688_v55  ;;  %v810_v61 = vmul.f32 %v1267_v46, %v806_v56 }
 0x113   : > { %v817_v62 = vmax.f32 %v699_v57, %v813_v49  ;;  %v697_v63 = vadd.f32 %v1274_v51, %v693_v58  ;;  %v815_v0 = vadd.f32 %v1274_v51, %v811_v59 }
 0x114   : > { %v816_v1 = vmax.f32 %v698_v60, %v812_v54  ;;  %v696_v2 = vadd.f32 %v1274_v51, %v692_v39  ;;  %v814_v3 = vadd.f32 %v1274_v51, %v810_v61 }
 0x115   : > { %821 = vst [vmem:[%s320_s9 + $0x8] sm:$0xff] %v817_v62  ;;  %v701_v4 = vmax.f32 %v583_v28, %v697_v63 }
 0x116   : > { %820 = vst [vmem:[%s320_s9] sm:$0xff] %v816_v1  ;;  %v700_v5 = vmax.f32 %v582_v31, %v696_v2 }
 0x117   : > { %v819_v6 = vmax.f32 %v701_v4, %v815_v0 }
 0x118   : > { %v818_v7 = vmax.f32 %v700_v5, %v814_v3 }
 0x119   : > { %823 = vst [vmem:[%s320_s9 + $0x18] sm:$0xff] %v819_v6 }
 0x11a   : > { %822 = vst [vmem:[%s320_s9 + $0x10] sm:$0xff] %v818_v7 }
 0x11b PF: > { %p12_p9 = scmp.ge.s32.totalorder %s1162_s22, 6   ;;  %s1345_s18 = smov %s1109_s19 }
 0x11c   : > { %s1346_s19 = smov %s1171_s25  ;;  %s1347_s20 = smov %s1162_s22 }
 0x11d   :  { %14 = sbr.rel (!%p12_p9) target bundleno = 2 (0x2), region = 116 }

// kernel: conv_block_forward.2
= control target key start
LH: loop header
LB: loop body
LE: loop exit
PB: predicated region body
PF: predicated region fallthrough
CT: control target
= control target key end

     0   :  { %s1109_s12 = smov 0   ;;  %s1111_s13 = smov 0   ;;  %s1259_s0 = inlined_call_operand.vmem [shape: f32[4,128,36], index: 0, kind: input, shape index: {}]   ;;  %s1260_s1 = inlined_call_operand.vmem [shape: f32[36,128], index: 1, kind: input, shape index: {}]   ;;  %s1261_s2 = inlined_call_operand.vmem [shape: f32[1,128], index: 2, kind: input, shape index: {}]   ;;  %s1262_s3 = inlined_call_operand.vmem [shape: f32[4,2,128], index: 3, kind: output, shape index: {}]  }
   0x1   :  { %s1113_s14 = smov 0  }
   0x2 LB: > { %s863_s15 = sadd.s32 4294967295, %s1087_s14   ;;  %s1126_s16 = sadd.s32 1, %s1087_s14   ;;  %s1087_s14 = sphi %s1113_s14, %s1265_s14   ;;  %s1083_s13 = sphi %s1111_s13, %s1264_s13   ;;  %s1079_s12 = sphi %s1109_s12, %s1263_s12  }
   0x3   : > { %s17_s17 = ssub.s32 %s1087_s14, %s1126_s16  ;;  %s20_s18 = sadd.s32 1, %s1083_s13 }
   0x4   : > { %p18_p0 = scmp.eq.s32.totalorder %s17_s17, 0  ;;  %p27_p1 = scmp.ne.s32.totalorder %s1083_s13, %s1079_s12 }
   0x5   : > { %p28_p2 = scmp.eq.s32.totalorder %s1087_s14, 0  ;;  %p866_p4 = scmp.ge.s32.totalorder %s1087_s14, 4 }
   0x6   : > { %s1135_s19 = scalar_select %p18_p0, %s1083_s13, %s20_s18  }
   0x7   : > { %p29_p3 = por %p28_p2, %p27_p1  ;;  %127 = sbr.rel (%p866_p4) target bundleno = 26 (0x1a), region = 24 }
   0xe   : > { %130 = sbr.rel (!%p29_p3) target bundleno = 26 (0x1a), region = 28  ;;  %s132_s20 = sand.u32 (%p29_p3), 1, %s1083_s13  }
   0xf   : > { %s908_s21 = sshll.u32 (%p29_p3), %s1087_s14, 5  ;;  %s867_s22 = sshll.u32 (%p29_p3), %s132_s20, 7 }
  0x10   : > { %s1143_s25 = scalar_lea.vmem (%p29_p3), %s1259_s0, %s908_s21  ;;  %s134_s26 = scalar_lea.vmem (%p29_p3), [#allocation2], %s867_s22 }
  0x11   : > { %v195_v0 = vld [vmem:[%s1143_s25] sm:$0xff] (%p29_p3)  ;;  %v197_v1 = vld [vmem:[%s1143_s25 + $0x8] sm:$0xff] (%p29_p3)  ;;  %v199_v2 = vld [vmem:[%s1143_s25 + $0x10] sm:$0xff] (%p29_p3) }
  0x12   : > { %196 = vst [vmem:[%s134_s26] sm:$0xff] (%p29_p3), %v195_v0  ;;  %198 = vst [vmem:[%s134_s26 + $0x8] sm:$0xff] (%p29_p3), %v197_v1  ;;  %v201_v3 = vld [vmem:[%s1143_s25 + $0x18] sm:$0xff] (%p29_p3)  ;;  %v203_v4 = vld [vmem:[%s1143_s25 + $0x80] sm:$0xff] (%p29_p3) }
  0x13   : > { %200 = vst [vmem:[%s134_s26 + $0x10] sm:$0xff] (%p29_p3), %v199_v2  ;;  %v205_v5 = vld [vmem:[%s1143_s25 + $0x88] sm:$0xff] (%p29_p3)  ;;  %202 = vst [vmem:[%s134_s26 + $0x18] sm:$0xff] (%p29_p3), %v201_v3  ;;  %v207_v6 = vld [vmem:[%s1143_s25 + $0x90] sm:$0xff] (%p29_p3) }
  0x14   : > { %204 = vst [vmem:[%s134_s26 + $0x20] sm:$0xff] (%p29_p3), %v203_v4  ;;  %206 = vst [vmem:[%s134_s26 + $0x28] sm:$0xff] (%p29_p3), %v205_v5  ;;  %v209_v7 = vld [vmem:[%s1143_s25 + $0x98] sm:$0xff] (%p29_p3)  ;;  %v211_v8 = vld [vmem:[%s1143_s25 + $0x100] sm:$0xff] (%p29_p3) }
  0x15   : > { %208 = vst [vmem:[%s134_s26 + $0x30] sm:$0xff] %v207_v6  ;;  %210 = vst [vmem:[%s134_s26 + $0x38] sm:$0xff] %v209_v7  ;;  %v213_v9 = vld [vmem:[%s1143_s25 + $0x108] sm:$0xff]  ;;  %v215_v10 = vld [vmem:[%s1143_s25 + $0x110] sm:$0xff] }
  0x16   : > { %212 = vst [vmem:[%s134_s26 + $0x40] sm:$0xff] %v211_v8  ;;  %v217_v11 = vld [vmem:[%s1143_s25 + $0x118] sm:$0xff]  ;;  %214 = vst [vmem:[%s134_s26 + $0x48] sm:$0xff] %v213_v9  ;;  %v219_v12 = vld [vmem:[%s1143_s25 + $0x180] sm:$0xff] }
  0x17   : > { %216 = vst [vmem:[%s134_s26 + $0x50] sm:$0xff] %v215_v10  ;;  %218 = vst [vmem:[%s134_s26 + $0x58] sm:$0xff] %v217_v11  ;;  %v221_v13 = vld [vmem:[%s1143_s25 + $0x188] sm:$0xff]  ;;  %v223_v14 = vld [vmem:[%s1143_s25 + $0x190] sm:$0xff] }
  0x18   : > { %220 = vst [vmem:[%s134_s26 + $0x60] sm:$0xff] %v219_v12  ;;  %222 = vst [vmem:[%s134_s26 + $0x68] sm:$0xff] %v221_v13  ;;  %v225_v15 = vld [vmem:[%s1143_s25 + $0x198] sm:$0xff] }
  0x19   : > { %224 = vst [vmem:[%s134_s26 + $0x70] sm:$0xff] %v223_v14  ;;  %226 = vst [vmem:[%s134_s26 + $0x78] sm:$0xff] %v225_v15 }
  0x1a PF: > { %p870_p5 = scmp.ge.s32.totalorder %s1087_s14, 1  ;;  %p231_p6 = scmp.lt.s32.totalorder %s1087_s14, 5 }
  0x1c   : > { %p232_p7 = pnand %p870_p5, %p231_p6 }
  0x1d   : > { %v269_v16 = vld [vmem:[%s1260_s1] sm:$0xff] (!%p232_p7)  ;;  %v270_v17 = vld [vmem:[%s1260_s1 + $0x8] sm:$0xff] (!%p232_p7)  ;;  %v271_v18 = vld [vmem:[%s1260_s1 + $0x10] sm:$0xff] (!%p232_p7)  ;;  %s238_s6 = sand.u32 (!%p232_p7), 1, %s1079_s12   ;;  %vm281_vm0 = vcmask (!%p232_p7), 293888   ;;  %vm294_vm1 = vcmask (!%p232_p7), 1043456  }
  0x1e   : > { %235 = sbr.rel (%p232_p7) target bundleno = 303 (0x12f), region = 66  ;;  %v1009_v19 = vpack.c.bf16 (!%p232_p7), %v270_v17, %v269_v16  ;;  %v272_v20 = vld [vmem:[%s1260_s1 + $0x18] sm:$0xff] (!%p232_p7)  ;;  %s871_s9 = sshll.u32 (!%p232_p7), %s238_s6, 7  ;;  %v273_v24 = vld [vmem:[%s1260_s1 + $0x20] sm:$0xf] (!%p232_p7)  ;;  %vm801_vm2 = vcmask (!%p232_p7), 1040384  }
  0x1f   : > { %v1013_v21 = vpack.c.bf16 (!%p232_p7), %v272_v20, %v271_v18  ;;  %s1176_s10 = scalar_lea.vmem (!%p232_p7), [#allocation2], %s871_s9  ;;  %v1224_v39 = vld [vmem:[%s1261_s2] ss:$0 sm:$0xff] (!%p232_p7)  ;;  %p261_p8 = scmp.lt.s32.totalorder (!%p232_p7), %s863_s15, 3 }
  0x20   : > { %1010 = vmatprep.subr.bf16.mxu0 (!%p232_p7), %v1009_v19  ;;  %1018 = vmatprep.subr.bf16.mxu1 (!%p232_p7), %v1009_v19  ;;  %v265_v22 = vld [vmem:[%s1176_s10] sm:$0xff] (!%p232_p7)  ;;  %v266_v25 = vld [vmem:[%s1176_s10 + $0x8] sm:$0xff] (!%p232_p7)  ;;  %v267_v27 = vld [vmem:[%s1176_s10 + $0x10] sm:$0xff] (!%p232_p7) }
  0x21   : > { %v879_v23 = vld [vmem:[%s1176_s10 + $0x20] sm:$0xff] (!%p232_p7)  ;;  %1012 = vmatpush3.bf16.msra.mxu0 (!%p232_p7), %v1009_v19  ;;  %1020 = vmatpush3.bf16.msra.mxu1 (!%p232_p7), %v1009_v19  ;;  %v880_v26 = vld [vmem:[%s1176_s10 + $0x28] sm:$0xff] (!%p232_p7)  ;;  %v881_v28 = vld [vmem:[%s1176_s10 + $0x30] sm:$0xff] (!%p232_p7) }
  0x22   : > { %1014 = vmatprep.subr.bf16.mxu0 (!%p232_p7), %v1013_v21  ;;  %1022 = vmatprep.subr.bf16.mxu1 (!%p232_p7), %v1013_v21  ;;  %v268_v29 = vld [vmem:[%s1176_s10 + $0x18] sm:$0xff] (!%p232_p7)  ;;  %v888_v31 = vld [vmem:[%s1176_s10 + $0x40] sm:$0xff] (!%p232_p7)  ;;  %v889_v33 = vld [vmem:[%s1176_s10 + $0x48] sm:$0xff] (!%p232_p7) }
  0x23   : > { %955 = vmatprep.mubr.msk.f32.mxu0 (!%p232_p7), %vm281_vm0, %v265_v22  ;;  %971 = vmatprep.mubr.msk.f32.mxu1 (!%p232_p7), %vm281_vm0, %v879_v23  ;;  %v882_v30 = vld [vmem:[%s1176_s10 + $0x38] sm:$0xff] (!%p232_p7)  ;;  %v897_v32 = vld [vmem:[%s1176_s10 + $0x60] sm:$0xff] (!%p232_p7)  ;;  %v898_v34 = vld [vmem:[%s1176_s10 + $0x68] sm:$0xff] (!%p232_p7) }
  0x24   : > { %v890_v35 = vld [vmem:[%s1176_s10 + $0x50] sm:$0xff] (!%p232_p7)  ;;  %v891_v37 = vld [vmem:[%s1176_s10 + $0x58] sm:$0xff] (!%p232_p7) }
  0x25   : > { %1016 = vmatpush3.bf16.msra.mxu0 %v1013_v21  ;;  %1024 = vmatpush3.bf16.msra.mxu1 %v1013_v21  ;;  %v899_v36 = vld [vmem:[%s1176_s10 + $0x70] sm:$0xff]  ;;  %v900_v38 = vld [vmem:[%s1176_s10 + $0x78] sm:$0xff]  ;;  %s1267_s15 = smov (!%p261_p8, %s863_s15), 3 }
  0x26   : > { %953 = vmatprep.subr.msk.mxu0 %vm294_vm1, %v273_v24  ;;  %969 = vmatprep.subr.msk.mxu1 %vm294_vm1, %v273_v24  ;;  %s872_s20 = sshll.u32 %s1267_s15, 1 }
  0x27   : > { %s264_s23 = scalar_lea.vmem %s1262_s3, %s872_s20 }
  0x29   : > { %954 = vmatpush3.msk.msra.mxu0 %vm294_vm1, %v273_v24  ;;  %970 = vmatpush3.msk.msra.mxu1 %vm294_vm1, %v273_v24 }
  0x2a   : > { %956 = vmatmul.mubr.msk.f32.vlgmr.msra.gmra.mrb[0].mxu0 %vm281_vm0, %v266_v25  ;;  %972 = vmatmul.mubr.msk.f32.vlgmr.msra.gmra.mrb[0].mxu1 %vm281_vm0, %v880_v26 }
  0x2b   : > { %1026 = vmatprep.subr.bf16.mxu0 %v1009_v19  ;;  %1034 = vmatprep.subr.bf16.mxu1 %v1009_v19 }
  0x2c   : > { %1028 = vmatpush3.bf16.msra.mxu0 %v1009_v19  ;;  %1036 = vmatpush3.bf16.msra.mxu1 %v1009_v19 }
  0x2d   : > { %958 = vmatprep.mubr.msk.f32.mxu0 %vm281_vm0, %v267_v27  ;;  %974 = vmatprep.mubr.msk.f32.mxu1 %vm281_vm0, %v881_v28 }
  0x2e   : > { %959 = vmatmul.mubr.msk.f32.gmra.mrb[2].mxu0 %vm281_vm0, %v268_v29  ;;  %975 = vmatmul.mubr.msk.f32.gmra.mrb[2].mxu1 %vm281_vm0, %v882_v30 }
  0x2f   : > { %1030 = vmatprep.subr.bf16.mxu0 %v1013_v21  ;;  %1038 = vmatprep.subr.bf16.mxu1 %v1013_v21 }
  0x30   : > { %1032 = vmatpush3.bf16.msra.mxu0 %v1013_v21  ;;  %1040 = vmatpush3.bf16.msra.mxu1 %v1013_v21 }
  0x31   : > { %985 = vmatprep.subr.msk.mxu0 %vm294_vm1, %v273_v24  ;;  %1001 = vmatprep.subr.msk.mxu1 %vm294_vm1, %v273_v24 }
  0x32   : > { %987 = vmatprep.mubr.msk.f32.mxu0 %vm281_vm0, %v888_v31  ;;  %1003 = vmatprep.mubr.msk.f32.mxu1 %vm281_vm0, %v897_v32 }
  0x34   : > { %986 = vmatpush3.msk.msra.mxu0 %vm294_vm1, %v273_v24  ;;  %1002 = vmatpush3.msk.msra.mxu1 %vm294_vm1, %v273_v24 }
  0x35   : > { %988 = vmatmul.mubr.msk.f32.vlgmr.msra.gmra.mrb[4].mxu0 %vm281_vm0, %v889_v33  ;;  %1004 = vmatmul.mubr.msk.f32.vlgmr.msra.gmra.mrb[4].mxu1 %vm281_vm0, %v898_v34 }
  0x36   : > { %990 = vmatprep.mubr.msk.f32.mxu0 %vm281_vm0, %v890_v35  ;;  %1006 = vmatprep.mubr.msk.f32.mxu1 %vm281_vm0, %v899_v36 }
  0x39   : > { %991 = vmatmul.mubr.msk.f32.gmra.mrb[6].mxu0 %vm281_vm0, %v891_v37  ;;  %1007 = vmatmul.mubr.msk.f32.gmra.mrb[6].mxu1 %vm281_vm0, %v900_v38 }
  0xfd   : > { %v957_v40 = vpop.f32.mrb[0].mxu0  ;;  %v973_v41 = vpop.f32.mrb[0].mxu1 }
  0xfe   : > { %v370_v42 = vadd.f32 %v957_v40, %v1224_v39  ;;  %v364_v43 = vpop.f32.mrb[1].mxu0  ;;  %v500_v44 = vadd.f32 %v973_v41, %v1224_v39  ;;  %v494_v45 = vpop.f32.mrb[1].mxu1 }
  0xff   : > { %v365_v46 = vadd.f32 %v1224_v39, %v364_v43  ;;  %v495_v47 = vadd.f32 %v1224_v39, %v494_v45 }
 0x100   : > { %v384_v48 = vmax.f32 %v370_v42, 0.0  ;;  %v514_v49 = vmax.f32 %v500_v44, 0.0 }
 0x101   : > { %v383_v50 = vmax.f32 %v365_v46, 0.0  ;;  %v513_v51 = vmax.f32 %v495_v47, 0.0  ;;  %v960_v52 = vpop.f32.mrb[2].mxu0  ;;  %v976_v53 = vpop.f32.mrb[2].mxu1 }
 0x102   : > { %v398_v54 = vmul.f32 %v384_v48, %v384_v48  ;;  %v528_v55 = vmul.f32 %v514_v49, %v514_v49  ;;  %v380_v56 = vadd.f32 %v960_v52, %v1224_v39  ;;  %v510_v57 = vadd.f32 %v976_v53, %v1224_v39  ;;  %v374_v58 = vpop.f32.mrb[3].mxu0  ;;  %v504_v59 = vpop.f32.mrb[3].mxu1 }
 0x103   : > { %v387_v60 = vadd.f32 %v384_v48, %v383_v50  ;;  %v397_v61 = vmul.f32 %v383_v50, %v383_v50  ;;  %v517_v62 = vadd.f32 %v514_v49, %v513_v51  ;;  %v527_v63 = vmul.f32 %v513_v51, %v513_v51 }
 0x104   : > { %v386_v0 = vmax.f32 %v380_v56, 0.0  ;;  %v516_v1 = vmax.f32 %v510_v57, 0.0  ;;  %v375_v2 = vadd.f32 %v1224_v39, %v374_v58  ;;  %v505_v3 = vadd.f32 %v1224_v39, %v504_v59 }
 0x105   : > { %v401_v4 = vadd.f32 %v398_v54, %v397_v61  ;;  %v531_v5 = vadd.f32 %v528_v55, %v527_v63 }
 0x106   : > { %v385_v6 = vmax.f32 %v375_v2, 0.0  ;;  %v515_v7 = vmax.f32 %v505_v3, 0.0  ;;  %v400_v8 = vmul.f32 %v386_v0, %v386_v0  ;;  %v530_v9 = vmul.f32 %v516_v1, %v516_v1 }
 0x108   : > { %v388_v10 = vadd.f32 %v387_v60, %v385_v6  ;;  %v399_v11 = vmul.f32 %v385_v6, %v385_v6  ;;  %v518_v12 = vadd.f32 %v517_v62, %v515_v7  ;;  %v529_v13 = vmul.f32 %v515_v7, %v515_v7  ;;  %v989_v14 = vpop.f32.mrb[4].mxu0  ;;  %v1005_v15 = vpop.f32.mrb[4].mxu1 }
 0x109   : > { %v630_v16 = vadd.f32 %v989_v14, %v1224_v39  ;;  %v624_v17 = vpop.f32.mrb[5].mxu0  ;;  %v760_v18 = vadd.f32 %v1005_v15, %v1224_v39  ;;  %v754_v19 = vpop.f32.mrb[5].mxu1 }
 0x10a   : > { %v389_v20 = vadd.f32 %v388_v10, %v386_v0  ;;  %v402_v21 = vadd.f32 %v401_v4, %v399_v11  ;;  %v519_v22 = vadd.f32 %v518_v12, %v516_v1  ;;  %v532_v23 = vadd.f32 %v531_v5, %v529_v13 }
 0x10b   : > { %v644_v24 = vmax.f32 %v630_v16, 0.0  ;;  %v625_v25 = vadd.f32 %v1224_v39, %v624_v17  ;;  %v774_v26 = vmax.f32 %v760_v18, 0.0  ;;  %v755_v27 = vadd.f32 %v1224_v39, %v754_v19 }
 0x10c   : > { %v390_v28 = vrot.slane %v389_v20, 4  ;;  %v403_v29 = vadd.f32 %v402_v21, %v400_v8  ;;  %v520_v30 = vrot.slane %v519_v22, 4  ;;  %v533_v31 = vadd.f32 %v532_v23, %v530_v9  ;;  %v992_v32 = vpop.f32.mrb[6].mxu0  ;;  %v1008_v33 = vpop.f32.mrb[6].mxu1 }
 0x10d   : > { %v658_v34 = vmul.f32 %v644_v24, %v644_v24  ;;  %v643_v35 = vmax.f32 %v625_v25, 0.0  ;;  %v788_v36 = vmul.f32 %v774_v26, %v774_v26  ;;  %v773_v37 = vmax.f32 %v755_v27, 0.0  ;;  %v634_v38 = vpop.f32.mrb[7].mxu0  ;;  %v764_v40 = vpop.f32.mrb[7].mxu1 }
 0x10e   : > { %v391_v41 = vadd.f32 %v390_v28, %v389_v20  ;;  %v404_v42 = vrot.slane %v403_v29, 4  ;;  %v521_v43 = vadd.f32 %v520_v30, %v519_v22  ;;  %v534_v44 = vrot.slane %v533_v31, 4 }
 0x10f   : > { %v647_v45 = vadd.f32 %v644_v24, %v643_v35  ;;  %v657_v46 = vmul.f32 %v643_v35, %v643_v35  ;;  %v777_v47 = vadd.f32 %v774_v26, %v773_v37  ;;  %v787_v48 = vmul.f32 %v773_v37, %v773_v37 }
 0x110   : > { %v392_v49 = vrot.slane %v391_v41, 2  ;;  %v405_v50 = vadd.f32 %v404_v42, %v403_v29  ;;  %v522_v51 = vrot.slane %v521_v43, 2  ;;  %v535_v52 = vadd.f32 %v534_v44, %v533_v31 }
 0x111   : > { %v661_v53 = vadd.f32 %v658_v34, %v657_v46  ;;  %v791_v54 = vadd.f32 %v788_v36, %v787_v48  ;;  %v640_v55 = vadd.f32 %v992_v32, %v1224_v39  ;;  %v770_v56 = vadd.f32 %v1008_v33, %v1224_v39 }
 0x112   : > { %v393_v57 = vadd.f32 %v392_v49, %v391_v41  ;;  %v406_v58 = vrot.slane %v405_v50, 2  ;;  %v523_v59 = vadd.f32 %v522_v51, %v521_v43  ;;  %v536_v60 = vrot.slane %v535_v52, 2 }
 0x113   : > { %v646_v61 = vmax.f32 %v640_v55, 0.0  ;;  %v776_v62 = vmax.f32 %v770_v56, 0.0  ;;  %v635_v63 = vadd.f32 %v1224_v39, %v634_v38  ;;  %v765_v0 = vadd.f32 %v1224_v39, %v764_v40 }
 0x114   : > { %v394_v1 = vrot.slane %v393_v57, 1  ;;  %v407_v2 = vadd.f32 %v406_v58, %v405_v50  ;;  %v524_v3 = vrot.slane %v523_v59, 1  ;;  %v537_v4 = vadd.f32 %v536_v60, %v535_v52 }
 0x115   : > { %v790_v5 = vmul.f32 %v776_v62, %v776_v62  ;;  %v645_v6 = vmax.f32 %v635_v63, 0.0  ;;  %v775_v7 = vmax.f32 %v765_v0, 0.0  ;;  %v660_v19 = vmul.f32 %v646_v61, %v646_v61 }
 0x116   : > { %v395_v8 = vadd.f32 %v394_v1, %v393_v57  ;;  %v408_v9 = vrot.slane %v407_v2, 1  ;;  %v525_v10 = vadd.f32 %v524_v3, %v523_v59  ;;  %v538_v11 = vrot.slane %v537_v4, 1 }
 0x117   : > { %v648_v12 = vadd.f32 %v647_v45, %v645_v6  ;;  %v659_v13 = vmul.f32 %v645_v6, %v645_v6  ;;  %v778_v14 = vadd.f32 %v777_v47, %v775_v7  ;;  %v789_v15 = vmul.f32 %v775_v7, %v775_v7 }
 0x118   : > { %v409_v16 = vadd.f32 %v408_v9, %v407_v2  ;;  %v526_v17 = vadd.f32 %v525_v10, %v395_v8  ;;  %v539_v18 = vadd.f32 %v538_v11, %v537_v4 }
 0x119   : > { %v649_v39 = vadd.f32 %v648_v12, %v646_v61  ;;  %v662_v20 = vadd.f32 %v661_v53, %v659_v13  ;;  %v779_v21 = vadd.f32 %v778_v14, %v776_v62  ;;  %v792_v22 = vadd.f32 %v791_v54, %v789_v15 }
 0x11a   : > { %v540_v23 = vadd.f32 %v539_v18, %v409_v16 }
 0x11b   : > { %v650_v24 = vrot.slane %v649_v39, 4  ;;  %v663_v25 = vadd.f32 %v662_v20, %v660_v19  ;;  %v780_v26 = vrot.slane %v779_v21, 4  ;;  %v793_v27 = vadd.f32 %v792_v22, %v790_v5 }
 0x11d   : > { %v651_v28 = vadd.f32 %v650_v24, %v649_v39  ;;  %v664_v29 = vrot.slane %v663_v25, 4  ;;  %v781_v30 = vadd.f32 %v780_v26, %v779_v21  ;;  %v794_v31 = vrot.slane %v793_v27, 4 }
 0x11f   : > { %v652_v32 = vrot.slane %v651_v28, 2  ;;  %v665_v33 = vadd.f32 %v664_v29, %v663_v25  ;;  %v782_v34 = vrot.slane %v781_v30, 2  ;;  %v795_v35 = vadd.f32 %v794_v31, %v793_v27 }
 0x121   : > { %v653_v36 = vadd.f32 %v652_v32, %v651_v28  ;;  %v666_v37 = vrot.slane %v665_v33, 2  ;;  %v783_v38 = vadd.f32 %v782_v34, %v781_v30  ;;  %v796_v40 = vrot.slane %v795_v35, 2 }
 0x123   : > { %v654_v41 = vrot.slane %v653_v36, 1  ;;  %v667_v42 = vadd.f32 %v666_v37, %v665_v33  ;;  %v784_v43 = vrot.slane %v783_v38, 1  ;;  %v797_v44 = vadd.f32 %v796_v40, %v795_v35 }
 0x125   : > { %v655_v45 = vadd.f32 %v654_v41, %v653_v36  ;;  %v668_v46 = vrot.slane %v667_v42, 1  ;;  %v798_v47 = vrot.slane %v797_v44, 1  ;;  %v785_v50 = vadd.f32 %v784_v43, %v783_v38 }
 0x127   : > { %v656_v48 = vadd.f32 %v655_v45, %v526_v17  ;;  %v669_v49 = vadd.f32 %v668_v46, %v667_v42  ;;  %v799_v53 = vadd.f32 %v798_v47, %v797_v44 }
 0x129   : > { %v670_v51 = vadd.f32 %v669_v49, %v540_v23  ;;  %v786_v52 = vadd.f32 %v785_v50, %v656_v48 }
 0x12b   : > { %v800_v54 = vadd.f32 %v799_v53, %v670_v51 }
 0x12d   : > { %v802_v55 = vsel %vm801_vm2, %v786_v52, %v800_v54 }
 0x12e   : > { %803 = vst [vmem:[%s264_s23] sm:$0x3] %v802_v55 }
 0x12f PF: > { %p10_p9 = scmp.ge.s32.totalorder %s1126_s16, 6   ;;  %s1263_s12 = smov %s1083_s13 }
 0x130   : > { %s1264_s13 = smov %s1135_s19  ;;  %s1265_s14 = smov %s1126_s16 }
 0x131   :  { %12 = sbr.rel (!%p10_p9) target bundleno = 2 (0x2), region = 108 }

</bundles_post_ra>
